<compile_context>
chip_gen: v6e
topology: v6e:2x2x1
jax: 0.10.0
libtpu: 0.0.40
codegen_flags: <defaults>
</compile_context>

<pallas_src>
import functools

import jax
import jax.numpy as jnp
import numpy as np
from jax.experimental import pallas as pl
from jax.experimental.pallas import tpu as pltpu


def _focal_loss_kernel(logits_ref, tgt_ref, alpha_ref, out_ref, *,
                       gamma, hw, tile, acc_w, folds, tiles_per_chunk,
                       num_tiles, use_alpha, need_mask, approx_recip):
    t_idx = pl.program_id(2)

    @pl.when(t_idx == 0)
    def _init():
        out_ref[...] = jnp.zeros_like(out_ref)

    x = logits_ref[0].astype(jnp.float32)          # (C, T) classes on sublanes
    tgt = tgt_ref[0].astype(jnp.int32)             # (1, T) widen narrow dtypes here

    # log-softmax over the class (sublane) axis, per spatial lane.
    m = jnp.max(x, axis=0, keepdims=True)          # (1, T)
    shifted = x - m                                # (C, T)
    e = jnp.exp(shifted)                           # (C, T)  the only exp per pixel
    sum_e = jnp.sum(e, axis=0, keepdims=True)      # (1, T)

    # one-hot gather of the target class (C is small; stays on the VPU).
    class_ids = jax.lax.broadcasted_iota(jnp.int32, x.shape, 0)
    onehot = (class_ids == tgt).astype(jnp.float32)

    s_t = jnp.sum(onehot * shifted, axis=0, keepdims=True)   # (1, T)
    e_t = jnp.sum(onehot * e, axis=0, keepdims=True)         # (1, T)

    logpt = s_t - jnp.log(sum_e)                             # (1, T)
    # Reuse exp(shifted): pt = e_t / sum_e, no second exp (EUP slot saving).
    pt = e_t * pl.reciprocal(sum_e, approx=approx_recip)

    if use_alpha:
        at = jnp.sum(onehot * alpha_ref[...], axis=0, keepdims=True)
        logpt = logpt * at

    w = jnp.maximum(1.0 - pt, 0.0)                 # clamp guards pow/NaN
    g = float(gamma)
    if g == int(g) and 0 <= int(g) <= 16:
        gi = int(g)                                # integer gamma: VALU multiply
        fw = jnp.ones_like(w) if gi == 0 else w    # chain, no EUP pow
        for _ in range(max(gi - 1, 0)):
            fw = fw * w
    else:
        fw = w ** g                                # non-integer gamma

    loss = -fw * logpt                             # (1, tile)

    def _accumulate(v):
        # Fold the wide per-tile loss into the narrow resident accumulator
        # with lane-aligned static slices (free relayout, VALU adds).
        acc = out_ref[0]                           # (1, acc_w)
        for k in range(folds):
            acc = acc + v[:, k * acc_w:(k + 1) * acc_w]
        out_ref[0] = acc

    if need_mask:
        # Only the globally-last spatial tile is partial; gate the mask there.
        g_tile = pl.program_id(1) * tiles_per_chunk + t_idx
        rem = hw - (num_tiles - 1) * tile          # static valid-lane count

        @pl.when(g_tile == num_tiles - 1)
        def _tail():
            lane = jax.lax.broadcasted_iota(jnp.int32, loss.shape, 1)
            # where-select (not multiplicative masking): garbage/NaN lanes from
            # the padded DMA tail do not propagate through a select.
            _accumulate(jnp.where(lane < rem, loss, 0.0))

        @pl.when(g_tile != num_tiles - 1)
        def _body():
            _accumulate(loss)
    else:
        _accumulate(loss)


def _tpu_vmem_capacity_bytes():
    try:
        return int(pltpu.get_tpu_info().vmem_capacity_bytes)
    except Exception:
        return 64 << 20        # conservative (v7x per-TensorCore) fallback


def focal_loss(logits, target, gamma=2, alpha=None, size_average=True,
               step_bytes=8 << 20, acc_lanes=1024, tile_lanes=None,
               approx_recip=False):
    """Pallas TPU implementation of FocalLoss.forward.

    logits: (N, C, *spatial) float32/bfloat16 (NCHW-style) or (M, C).
    target: integer class ids (int8/int16/int32 accepted as-is), flattens to
            N*prod(spatial) (or M) elements.
    alpha : None | float | list of per-class weights (as in the PyTorch module).
    step_bytes : per-grid-step input byte target (raise towards ~10-16 MiB on
                 v7x / high-HBM-BW parts; the VMEM budget still caps it).
    acc_lanes  : lane width of the resident partial-sum accumulator.
    tile_lanes : optional explicit spatial tile override (testing/tuning).
    """
    if logits.ndim > 2:
        N, C = int(logits.shape[0]), int(logits.shape[1])
        HW = int(np.prod(logits.shape[2:]))
        x3d = logits.reshape(N, C, HW)               # free view; NO transpose
    else:
        # Cold classification path: the transpose is one extra HBM pass.
        M0, C = int(logits.shape[0]), int(logits.shape[1])
        N, HW = 1, M0
        x3d = jnp.transpose(logits).reshape(1, C, M0)

    tgt3d = target.reshape(N, 1, HW)
    if not jnp.issubdtype(tgt3d.dtype, jnp.integer):
        tgt3d = tgt3d.astype(jnp.int32)              # keep int8/int16 as-is
    m_total = N * HW

    use_alpha = alpha is not None
    if use_alpha:
        if isinstance(alpha, (float, int)):
            alpha = [float(alpha), 1.0 - float(alpha)]   # matches PyTorch __init__
        alpha_arr = jnp.asarray(alpha, jnp.float32).reshape(-1, 1)
        assert alpha_arr.shape[0] == C, "alpha must have one entry per class"
    else:
        alpha_arr = jnp.ones((C, 1), jnp.float32)        # unused inside kernel

    # ---- tile sizing: per-step byte budget capped by per-generation VMEM ----
    logit_bytes = jnp.dtype(x3d.dtype).itemsize
    tgt_bytes = jnp.dtype(tgt3d.dtype).itemsize
    bytes_per_lane = C * logit_bytes + tgt_bytes

    vmem_cap = _tpu_vmem_capacity_bytes()
    vmem_budget = min(int(vmem_cap * 0.4), 48 << 20)     # double-buffered inputs
    tile_cap = min(step_bytes // bytes_per_lane,
                   vmem_budget // (2 * bytes_per_lane))
    tile_cap = max(int(tile_cap), 1024)

    if tile_lanes is not None:
        tile = int(tile_lanes)
        acc_w = int(min(acc_lanes, tile))
        assert tile <= HW
        assert tile == HW or tile % 128 == 0
        assert acc_w == tile or (acc_w % 128 == 0 and tile % acc_w == 0)
    elif HW <= acc_lanes:
        tile = HW
        acc_w = HW
    else:
        acc_w = int(acc_lanes)
        assert acc_w % 128 == 0
        tile = max((min(tile_cap, HW) // acc_w) * acc_w, acc_w)
    folds = max(tile // acc_w, 1)

    num_tiles = pl.cdiv(HW, tile)
    need_mask = (HW % tile) != 0                     # only the last tile is partial

    # v7x megacore: keep the combined parallel extent even when N alone is odd.
    if (N % 2 == 1) and (num_tiles % 2 == 0) and num_tiles >= 2:
        chunks = 2
    else:
        chunks = 1                                   # TODO(synk): odd N with odd
        # num_tiles leaves one v7x TensorCore underused; would need padded tiles.
    tiles_per_chunk = num_tiles // chunks

    # Raise the scoped VMEM limit (v5e default is 16 MiB) just enough for the
    # double-buffered tiles, but never past the physical capacity.
    footprint = 2 * tile * bytes_per_lane + 2 * acc_w * 4 + C * 512
    vmem_limit = int(min(vmem_cap - (8 << 20),
                         max(footprint + (8 << 20), 32 << 20)))

    kernel = functools.partial(
        _focal_loss_kernel, gamma=float(gamma), hw=HW, tile=tile, acc_w=acc_w,
        folds=folds, tiles_per_chunk=tiles_per_chunk, num_tiles=num_tiles,
        use_alpha=use_alpha, need_mask=need_mask, approx_recip=approx_recip)

    partials = pl.pallas_call(
        kernel,
        out_shape=jax.ShapeDtypeStruct((N, chunks, acc_w), jnp.float32),
        grid_spec=pltpu.PrefetchScalarGridSpec(
            num_scalar_prefetch=0,
            grid=(N, chunks, tiles_per_chunk),
            in_specs=[
                pl.BlockSpec((1, C, tile),
                             lambda i, c, t: (i, 0, c * tiles_per_chunk + t)),
                pl.BlockSpec((1, 1, tile),
                             lambda i, c, t: (i, 0, c * tiles_per_chunk + t)),
                pl.BlockSpec((C, 1), lambda i, c, t: (0, 0)),   # alpha (resident)
            ],
            out_specs=pl.BlockSpec((1, 1, acc_w), lambda i, c, t: (i, c, 0)),
        ),
        compiler_params=pltpu.CompilerParams(
            dimension_semantics=("parallel", "parallel", "arbitrary"),
            vmem_limit_bytes=vmem_limit),
    )(x3d, tgt3d, alpha_arr)

    total = jnp.sum(partials)            # tiny (N*chunks*acc_w) reduction
    if size_average:
        return total / jnp.float32(m_total)
    return total


def _focal_loss_ref(logits, target, gamma=2.0, alpha=None, size_average=True):
    """Pure-JAX reference mirroring the PyTorch code exactly."""
    if logits.ndim > 2:
        N, C = logits.shape[0], logits.shape[1]
        x2d = jnp.transpose(logits.reshape(N, C, -1), (0, 2, 1)).reshape(-1, C)
    else:
        x2d = logits
    t = target.reshape(-1).astype(jnp.int32)
    logp = jax.nn.log_softmax(x2d.astype(jnp.float32), axis=1)
    logpt = jnp.take_along_axis(logp, t[:, None], axis=1)[:, 0]
    pt = jnp.exp(logpt)
    if alpha is not None:
        if isinstance(alpha, (float, int)):
            alpha = [float(alpha), 1.0 - float(alpha)]
        at = jnp.asarray(alpha, jnp.float32)[t]
        logpt = logpt * at
    loss = -1.0 * (1.0 - pt) ** float(gamma) * logpt
    return loss.mean() if size_average else loss.sum()


if __name__ == "__main__":
    key = jax.random.PRNGKey(0)
    k1, k2, k3, k4, k5, k6 = jax.random.split(key, 6)

    # 1) NCHW f32, per-class alpha list, mean reduction, default (single-tile) path.
    N, C, H, W = 2, 4, 16, 16
    logits = jax.random.normal(k1, (N, C, H, W), dtype=jnp.float32)
    target = jax.random.randint(k2, (N, H, W), 0, C, dtype=jnp.int32)
    alpha = [0.1, 0.2, 0.3, 0.4]
    out = jax.block_until_ready(focal_loss(logits, target, gamma=2.0, alpha=alpha))
    ref = _focal_loss_ref(logits, target, gamma=2.0, alpha=alpha)
    np.testing.assert_allclose(np.asarray(out), np.asarray(ref), rtol=1e-5, atol=1e-5)

    # 2) alpha=None, sum reduction, multi-tile accumulation (tile=128, HW=256),
    #    approximate EUP reciprocal for pt.
    out2 = jax.block_until_ready(
        focal_loss(logits, target, gamma=2.0, alpha=None, size_average=False,
                   tile_lanes=128, acc_lanes=128, approx_recip=True))
    ref2 = _focal_loss_ref(logits, target, gamma=2.0, alpha=None, size_average=False)
    np.testing.assert_allclose(np.asarray(out2), np.asarray(ref2), rtol=2e-3, atol=1e-3)

    # 3) N=1 with even tile count -> chunks=2 parallel split (v7x path), partial
    #    last tile (HW=464, tile=256 -> rem=208), folds=2 (acc_w=128).
    logits3 = jax.random.normal(k3, (1, 4, 464), dtype=jnp.float32)
    target3 = jax.random.randint(k4, (1, 464), 0, 4, dtype=jnp.int32)
    out3 = jax.block_until_ready(
        focal_loss(logits3, target3, gamma=2.0, alpha=alpha,
                   tile_lanes=256, acc_lanes=128))
    ref3 = _focal_loss_ref(logits3, target3, gamma=2.0, alpha=alpha)
    np.testing.assert_allclose(np.asarray(out3), np.asarray(ref3), rtol=1e-5, atol=1e-5)

    # 4) bf16 logits, float alpha (binary), int8 targets (narrow dtype end-to-end),
    #    integer gamma=3 multiply chain.
    logits4 = jax.random.normal(k5, (2, 2, 8, 8), dtype=jnp.float32).astype(jnp.bfloat16)
    target4 = jax.random.randint(k6, (2, 8, 8), 0, 2, dtype=jnp.int32).astype(jnp.int8)
    out4 = jax.block_until_ready(focal_loss(logits4, target4, gamma=3, alpha=0.25))
    ref4 = _focal_loss_ref(logits4, target4, gamma=3, alpha=0.25)
    np.testing.assert_allclose(np.asarray(out4), np.asarray(ref4), rtol=1e-5, atol=1e-5)

    # 5) 2-D (M, C) classification path (cold), non-integer gamma (pow branch).
    logits5 = jax.random.normal(k1, (16, 4), dtype=jnp.float32)
    target5 = jax.random.randint(k2, (16,), 0, 4, dtype=jnp.int32)
    out5 = jax.block_until_ready(focal_loss(logits5, target5, gamma=1.5))
    ref5 = _focal_loss_ref(logits5, target5, gamma=1.5)
    np.testing.assert_allclose(np.asarray(out5), np.asarray(ref5), rtol=1e-5, atol=1e-5)

    print("KERNEL_OK")
</pallas_src>

<mosaic_0001>
module attributes {stable_mosaic.version = 11 : i64} {
  func.func @_focal_loss_kernel(%arg0: i32, %arg1: i32, %arg2: i32, %arg3: memref<1x4x256xf32, #tpu.memory_space<vmem>>, %arg4: memref<1x1x256xi32, #tpu.memory_space<vmem>>, %arg5: memref<4x1xf32, #tpu.memory_space<vmem>>, %arg6: memref<1x1x256xf32, #tpu.memory_space<vmem>>) attributes {dimension_semantics = [#tpu.dimension_semantics<parallel>, #tpu.dimension_semantics<parallel>, #tpu.dimension_semantics<arbitrary>], iteration_bounds = array<i64: 2, 1, 1>, scalar_prefetch = 0 : i64, scratch_operands = 0 : i64, tpu.core_type = #tpu.core_type<tc>, window_params = [{transform_indices = @transform_0, window_bounds = array<i64: 1, 4, 256>}, {transform_indices = @transform_1, window_bounds = array<i64: 1, 1, 256>}, {pipeline_mode = #tpu.pipeline_mode<synchronous>, transform_indices = @transform_2, window_bounds = array<i64: 4, 1>}, {transform_indices = @transform_3, window_bounds = array<i64: 1, 1, 256>}]} {
    %c0_i32 = arith.constant 0 : i32
    %0 = arith.cmpi eq, %arg2, %c0_i32 : i32
    %1 = arith.extui %0 : i1 to i32
    %c0_i32_0 = arith.constant 0 : i32
    %2 = arith.cmpi ne, %1, %c0_i32_0 : i32
    scf.if %2 {
      %cst_21 = arith.constant 0.000000e+00 : f32
      %49 = vector.broadcast %cst_21 : f32 to vector<1x1x256xf32>
      %c0_22 = arith.constant 0 : index
      %c0_23 = arith.constant 0 : index
      %c0_24 = arith.constant 0 : index
      %50 = vector.load %arg6[%c0_22, %c0_23, %c0_24] : memref<1x1x256xf32, #tpu.memory_space<vmem>>, vector<1x1x256xf32>
      tpu.vector_store %arg6[%c0_22, %c0_23, %c0_24], %49 {strides = array<i32>} : memref<1x1x256xf32, #tpu.memory_space<vmem>>, vector<1x1x256xf32>,
    } else {
    }
    %c0 = arith.constant 0 : index
    %c0_1 = arith.constant 0 : index
    %c0_2 = arith.constant 0 : index
    %3 = vector.load %arg3[%c0, %c0_1, %c0_2] : memref<1x4x256xf32, #tpu.memory_space<vmem>>, vector<1x4x256xf32>
    %4 = vector.shape_cast %3 : vector<1x4x256xf32> to vector<4x256xf32>
    %c0_3 = arith.constant 0 : index
    %c0_4 = arith.constant 0 : index
    %c0_5 = arith.constant 0 : index
    %5 = vector.load %arg4[%c0_3, %c0_4, %c0_5] : memref<1x1x256xi32, #tpu.memory_space<vmem>>, vector<1x1x256xi32>
    %6 = vector.shape_cast %5 : vector<1x1x256xi32> to vector<1x256xi32>
    %cst = arith.constant dense<0xFF800000> : vector<256xf32>
    %7 = vector.multi_reduction <maximumf>, %4, %cst [0] : vector<4x256xf32> to vector<256xf32>
    %8 = vector.shape_cast %7 : vector<256xf32> to vector<1x256xf32>
    %9 = vector.broadcast %8 : vector<1x256xf32> to vector<4x256xf32>
    %10 = arith.subf %4, %9 : vector<4x256xf32>
    %11 = math.exp %10 : vector<4x256xf32>
    %cst_6 = arith.constant dense<0.000000e+00> : vector<256xf32>
    %12 = vector.multi_reduction <add>, %11, %cst_6 [0] : vector<4x256xf32> to vector<256xf32>
    %13 = vector.shape_cast %12 : vector<256xf32> to vector<1x256xf32>
    %14 = tpu.iota {dimensions = array<i32: 0>} : vector<4x256xi32>
    %15 = vector.broadcast %6 : vector<1x256xi32> to vector<4x256xi32>
    %16 = arith.cmpi eq, %14, %15 : vector<4x256xi32>
    %17 = arith.extui %16 : vector<4x256xi1> to vector<4x256xi32>
    %18 = arith.sitofp %17 : vector<4x256xi32> to vector<4x256xf32>
    %19 = arith.mulf %18, %10 : vector<4x256xf32>
    %cst_7 = arith.constant dense<0.000000e+00> : vector<256xf32>
    %20 = vector.multi_reduction <add>, %19, %cst_7 [0] : vector<4x256xf32> to vector<256xf32>
    %21 = vector.shape_cast %20 : vector<256xf32> to vector<1x256xf32>
    %22 = arith.mulf %18, %11 : vector<4x256xf32>
    %cst_8 = arith.constant dense<0.000000e+00> : vector<256xf32>
    %23 = vector.multi_reduction <add>, %22, %cst_8 [0] : vector<4x256xf32> to vector<256xf32>
    %24 = vector.shape_cast %23 : vector<256xf32> to vector<1x256xf32>
    %25 = math.log %13 : vector<1x256xf32>
    %26 = arith.subf %21, %25 : vector<1x256xf32>
    %27 = tpu.reciprocal %13 : vector<1x256xf32> -> vector<1x256xf32>
    %28 = arith.mulf %24, %27 : vector<1x256xf32>
    %c0_9 = arith.constant 0 : index
    %c0_10 = arith.constant 0 : index
    %29 = vector.load %arg5[%c0_9, %c0_10] : memref<4x1xf32, #tpu.memory_space<vmem>>, vector<4x1xf32>
    %30 = vector.broadcast %29 : vector<4x1xf32> to vector<4x256xf32>
    %31 = arith.mulf %18, %30 : vector<4x256xf32>
    %cst_11 = arith.constant dense<0.000000e+00> : vector<256xf32>
    %32 = vector.multi_reduction <add>, %31, %cst_11 [0] : vector<4x256xf32> to vector<256xf32>
    %33 = vector.shape_cast %32 : vector<256xf32> to vector<1x256xf32>
    %34 = arith.mulf %26, %33 : vector<1x256xf32>
    %cst_12 = arith.constant 1.000000e+00 : f32
    %35 = vector.broadcast %cst_12 : f32 to vector<1x256xf32>
    %36 = arith.subf %35, %28 : vector<1x256xf32>
    %cst_13 = arith.constant 0.000000e+00 : f32
    %37 = vector.broadcast %cst_13 : f32 to vector<1x256xf32>
    %38 = arith.maximumf %36, %37 : vector<1x256xf32>
    %39 = arith.mulf %38, %38 : vector<1x256xf32>
    %cst_14 = arith.constant 0.000000e+00 : f32
    %40 = vector.broadcast %cst_14 : f32 to vector<1x256xf32>
    %41 = arith.subf %40, %39 : vector<1x256xf32>
    %42 = arith.mulf %41, %34 : vector<1x256xf32>
    %c0_15 = arith.constant 0 : index
    %c0_16 = arith.constant 0 : index
    %c0_17 = arith.constant 0 : index
    %43 = vector.load %arg6[%c0_15, %c0_16, %c0_17] : memref<1x1x256xf32, #tpu.memory_space<vmem>>, vector<1x1x256xf32>
    %44 = vector.shape_cast %43 : vector<1x1x256xf32> to vector<1x256xf32>
    %45 = arith.addf %44, %42 : vector<1x256xf32>
    %c0_18 = arith.constant 0 : index
    %c0_19 = arith.constant 0 : index
    %c0_20 = arith.constant 0 : index
    %46 = vector.load %arg6[%c0_18, %c0_19, %c0_20] : memref<1x1x256xf32, #tpu.memory_space<vmem>>, vector<1x1x256xf32>
    %47 = vector.shape_cast %46 : vector<1x1x256xf32> to vector<1x256xf32>
    %48 = vector.shape_cast %45 : vector<1x256xf32> to vector<1x1x256xf32>
    tpu.vector_store %arg6[%c0_18, %c0_19, %c0_20], %48 {strides = array<i32>} : memref<1x1x256xf32, #tpu.memory_space<vmem>>, vector<1x1x256xf32>,
    return
  }
  func.func @transform_0(%arg0: i32, %arg1: i32, %arg2: i32) -> (i32, i32, i32) {
    %c1_i32 = arith.constant 1 : i32
    %0 = arith.muli %arg1, %c1_i32 : i32
    %1 = arith.addi %0, %arg2 : i32
    %c0_i32 = arith.constant 0 : i32
    %c0_i32_0 = arith.constant 0 : i32
    return %arg0, %c0_i32, %1 : i32, i32, i32
  }
  func.func @transform_1(%arg0: i32, %arg1: i32, %arg2: i32) -> (i32, i32, i32) {
    %c1_i32 = arith.constant 1 : i32
    %0 = arith.muli %arg1, %c1_i32 : i32
    %1 = arith.addi %0, %arg2 : i32
    %c0_i32 = arith.constant 0 : i32
    %c0_i32_0 = arith.constant 0 : i32
    return %arg0, %c0_i32, %1 : i32, i32, i32
  }
  func.func @transform_2(%arg0: i32, %arg1: i32, %arg2: i32) -> (i32, i32) {
    %c0_i32 = arith.constant 0 : i32
    %c0_i32_0 = arith.constant 0 : i32
    %c0_i32_1 = arith.constant 0 : i32
    return %c0_i32, %c0_i32_0 : i32, i32
  }
  func.func @transform_3(%arg0: i32, %arg1: i32, %arg2: i32) -> (i32, i32, i32) {
    %c0_i32 = arith.constant 0 : i32
    %c0_i32_0 = arith.constant 0 : i32
    return %arg0, %arg1, %c0_i32 : i32, i32, i32
  }
}

</mosaic_0001>

<bundles_post_ra>
// kernel: tpu_custom_call.1
= control target key start
LH: loop header
LB: loop body
LE: loop exit
PB: predicated region body
PF: predicated region fallthrough
CT: control target
= control target key end

     0   :  { %8 = vsyncpa [#allocation3], 0  ;;  %s966_s0 = inlined_call_operand.hbm [shape: f32[2,4,256], index: 0, kind: input, shape index: {}]   ;;  %s967_s1 = inlined_call_operand.vmem [shape: s32[2,1,256], index: 1, kind: input, shape index: {}]   ;;  %s968_s2 = inlined_call_operand.vmem [shape: f32[4,1], index: 2, kind: input, shape index: {}]   ;;  %s969_s3 = inlined_call_operand.hbm [shape: f32[2,1,256], index: 3, kind: output, shape index: {}]  }
   0x1   :  { %10 = vsyncpa [#allocation3 + $0x1], 0 }
   0x2   :  { %11 = vsyncpa [#allocation4], 0 }
   0x3   :  { %13 = vsyncpa [#allocation4 + $0x1], 0  ;;  %s782_s12 = smov 0   ;;  %s784_s13 = smov 0  }
   0x4   :  { %s786_s14 = smov 0   ;;  %s788_s15 = smov 0  }
   0x5   :  { %s790_s16 = smov 0   ;;  %s792_s17 = smov 0  }
   0x6 LB: > { %s550_s18 = sadd.s32 4294967295, %s755_s17   ;;  %s551_s19 = sadd.s32 4294967294, %s755_s17   ;;  %s755_s17 = sphi %s792_s17, %s19_s17   ;;  %s751_s16 = sphi %s790_s16, %s983_s16   ;;  %s747_s15 = sphi %s788_s15, %s982_s15   ;;  %s743_s14 = sphi %s786_s14, %s981_s14   ;;  %s739_s13 = sphi %s784_s13, %s980_s13   ;;  %s735_s12 = sphi %s782_s12, %s979_s12  }
   0x7   : > { %s38_s20 = sadd.s32 1, %s751_s16  ;;  %s49_s21 = sadd.s32 1, %s743_s14 }
   0x8   : > { %p40_p0 = scmp.ge.s32.totalorder %s38_s20, 2  ;;  %p56_p1 = scmp.ne.s32.totalorder %s743_s14, %s739_s13 }
   0x9   : > { %p57_p2 = scmp.eq.s32.totalorder %s755_s17, 0  ;;  %p62_p3 = scmp.ne.s32.totalorder %s739_s13, %s735_s12 }
   0xa   : > { %s985_s20 = smov (%p40_p0, %s38_s20), 0  ;;  %p63_p5 = scmp.eq.s32.totalorder %s550_s18, 0 }
   0xb   : > { %p823_p4 = por %p57_p2, %p56_p1  ;;  %s44_s23 = ssub.s32 %s751_s16, %s985_s20 }
   0xc   : > { %p139_p6 = scmp.eq.s32.totalorder %s550_s18, 1  ;;  %p47_p7 = scmp.eq.s32.totalorder %s44_s23, 0 }
   0xd   : > { %p829_p8 = por %p63_p5, %p62_p3  ;;  %p145_p10 = scmp.eq.s32.totalorder %s551_s19, 1 }
   0xe   : > { %p833_p9 = por %p139_p6, %p56_p1  ;;  %p582_p13 = scmp.lt.s32.totalorder %s755_s17, 2 }
   0xf   : > { %s838_s26 = scalar_select %p47_p7, %s743_s14, %s49_s21  }
  0x10   : > { %p840_p11 = por %p145_p10, %p62_p3  ;;  %s168_s28 = sand.u32 1, %s743_s14  }
  0x11   : > { %s554_s29 = sshll.u32 %s168_s28, 3  ;;  %s568_s30 = sshll.u32 %s751_s16, 7 }
  0x12   : > { %s973_s27 = scalar_select %p840_p11, 1, 0 }
  0x13   : > { %s181_s6 = scalar_lea.hbm %s966_s0, %s568_s30  ;;  %s172_s7 = scalar_lea.vmem [#allocation2], %s554_s29 }
  0x14   : > { %s183_s8 = sshll.u32 %s172_s7, 4  ;;  %p853_p0 = pnand %p582_p13, %p823_p4  ;;  %s184_s8 = int_to_ptr.vmem [resolvable:$true] %s183_s8 }
  0x15   : > { %p557_p1 = scmp.ge.s32.totalorder %s755_s17, 1  ;;  %p202_p2 = scmp.lt.s32.totalorder %s755_s17, 3 }
  0x16   : > { %s169_s10 = scalar_lea.sflag [#allocation3], %s168_s28  ;;  %p649_p3 = pneg %p853_p0 }
  0x17   : > { %s660_s11 = scalar_lea.vmem %s184_s8, 128  ;;  %s757_s18 = smov [#allocation2]  }
  0x18   : > { %p661_p5 = scmp.ne.s32.totalorder %s184_s8, %s660_s11  ;;  %s665_s19 = sshll.u32 %s757_s18, 4  ;;  %s666_s19 = int_to_ptr.vmem [resolvable:$false] %s665_s19 }
  0x19   : > { %s667_s21 = scalar_lea.vmem %s666_s19, 256  ;;  %p668_p10 = scmp.lt.s32.totalorder %s184_s8, %s666_s19 }
  0x1a   : > { %p663_p6 = pnand %p661_p5, %p649_p3  ;;  %p669_p12 = scmp.lt.s32.totalorder %s667_s21, %s660_s11 }
  0x1c   : > { %p664_p7 = pneg %p663_p6  ;;  %p670_p4 = por %p669_p12, %p668_p10 }
  0x1e   : > { %p671_p13 = pnand %p670_p4, %p664_p7 }
  0x20   : > { %674 = shalt.err (!%p671_p13)
}
  0x21   : > { %577 = dma.hbm_to_vmem [thread:$0]  (!%p853_p0), %s181_s6, 128, %s184_s8, %s169_s10  }
  0x22   : > { %p203_p11 = pnand %p557_p1, %p202_p2 }
  0x23   : > { %s868_s22 = sand.u32 (!%p203_p11), 1, %s739_s13  }
  0x24   : > { %206 = sbr.rel (%p203_p11) target bundleno = 208 (0xd0), region = 32  ;;  %s558_s23 = sshll.u32 (!%p203_p11), %s868_s22, 3 }
  0x25   : > { %s209_s28 = scalar_lea.sflag (!%p203_p11), [#allocation3], %s868_s22  ;;  %s212_s29 = scalar_lea.vmem (!%p203_p11), [#allocation2], %s558_s23 }
  0x29   : > { %726 = dma.done.wait (%p829_p8), %s209_s28, 128  }
  0x2a   : > { %728 = vsyncadd (%p829_p8), %s209_s28, 4294967168  ;;  %s559_s30 = sshll.u32 %s868_s22, 1  ;;  %p248_p12 = scmp.lt.s32.totalorder %s747_s15, 1  ;;  %v261_v0 = vlaneseq  ;;  %v758_v1 = vmov 0   ;;  %v759_v4 = vmov 0.0   ;;  %v266_v13 = vld [vmem:[%s212_s29] sm:$0xff] }
  0x2b   : > { %635 = vset.pattern.permute.xlu0 %v758_v1  ;;  %s885_s5 = scalar_lea.vmem [#allocation5], %s559_s30  ;;  %v371_v7 = vld [vmem:[%s968_s2] sm:$0xf]  ;;  %v269_v14 = vcombine.high %v266_v13, %v266_v13  ;;  %vm271_vm3 = vcmask 1043456   ;;  %s569_s11 = sshll.u32 %s747_s15, 5 }
  0x2c   : > { %s249_s4 = scalar_select %p248_p12, %s747_s15, 1  ;;  %vm879_vm0 = vcmp.lt.s32.totalorder %v261_v0, 256  ;;  %v883_v3 = vshrl.u32 %v261_v0, 7  ;;  %374 = vperm.xlu0 %635, %v371_v7   ;;  %v272_v15 = vsel %vm271_vm3, %v266_v13, -inf }
  0x2d   : > { %265 = vst.msk [vmem:[%s885_s5] sm:$0x3] %vm879_vm0, %v759_v4  ;;  %v279_v16 = vsel %vm271_vm3, %v269_v14, -inf  ;;  %v273_v17 = vrot.slane %v272_v15, 4  ;;  %s447_s18 = sshll.u32 %s885_s5, 4  ;;  %s445_s23 = scalar_lea.hbm %s969_s3, %s569_s11  ;;  %s448_s18 = int_to_ptr.vmem [resolvable:$true] %s447_s18 }
  0x2e   : > { %s560_s24 = sshll.u32 %s249_s4, 1  ;;  %v314_v5 = vsub.s32 0, %v883_v3  ;;  %v318_v6 = vsub.s32 1, %v883_v3  ;;  %v280_v18 = vrot.slane %v279_v16, 4  ;;  %s431_s28 = scalar_lea.sflag [#allocation4], %s868_s22 }
  0x2f   : > { %s254_s8 = scalar_lea.vmem %s967_s1, %s560_s24  ;;  %v274_v19 = vmax.f32 %v272_v15, %v273_v17  ;;  %s675_s29 = scalar_lea.vmem %s448_s18, 32 }
  0x30   : > { %v267_v8 = vld [vmem:[%s254_s8] sm:$0x3]  ;;  %v281_v20 = vmax.f32 %v279_v16, %v280_v18  ;;  %p676_p8 = scmp.ne.s32.totalorder %s448_s18, %s675_s29  ;;  %s761_s30 = smov [#allocation5]  }
  0x31   : > { %v315_v9 = vrot.slane %v267_v8, %v314_v5  ;;  %v319_v10 = vrot.slane %v267_v8, %v318_v6  ;;  %v275_v21 = vrot.slane %v274_v19, 2  ;;  %s679_s4 = sshll.u32 %s761_s30, 4  ;;  %s680_s4 = int_to_ptr.vmem [resolvable:$false] %s679_s4 }
  0x32   : > { %v282_v22 = vrot.slane %v281_v20, 2  ;;  %p677_p11 = pnand %p676_p8, %p833_p9  ;;  %s681_s15 = scalar_lea.vmem %s680_s4, 64 }
  0x33   : > { %vm320_vm1 = vcmp.eq.s32.totalorder %v883_v3, %v315_v9  ;;  %vm321_vm2 = vcmp.eq.s32.totalorder %v883_v3, %v319_v10  ;;  %v276_v23 = vmax.f32 %v274_v19, %v275_v21  ;;  %p682_p1 = scmp.lt.s32.totalorder %s448_s18, %s680_s4  ;;  %p683_p2 = scmp.lt.s32.totalorder %s681_s15, %s675_s29 }
  0x34   : > { %v900_v11 = vsel %vm320_vm1, 1.0, %v759_v4  ;;  %v902_v12 = vsel %vm321_vm2, 1.0, %v759_v4  ;;  %v283_v24 = vmax.f32 %v281_v20, %v282_v22  ;;  %p678_p0 = pneg %p677_p11 }
  0x35   : > { %v277_v25 = vrot.slane %v276_v23, 1  ;;  %p684_p3 = por %p683_p2, %p682_p1 }
  0x36   : > { %v284_v26 = vrot.slane %v283_v24, 1 }
  0x37   : > { %v278_v27 = vmax.f32 %v276_v23, %v277_v25  ;;  %p685_p5 = pnand %p684_p3, %p678_p0 }
  0x38   : > { %v285_v28 = vmax.f32 %v283_v24, %v284_v26 }
  0x3a   : > { %v288_v29 = vcombine.low %v278_v27, %v285_v28 }
  0x3c   : > { %v290_v30 = vsub.f32 %v266_v13, %v288_v29 }
  0x3e   : > { %v291_v31 = vmul.f32 1.442695, %v290_v30  ;;  %v327_v52 = vcombine.high %v290_v30, %v290_v30  ;;  %v329_v57 = vmul.f32 %v900_v11, %v290_v30 }
  0x40   : > { %637 = vpow2.f32 %v291_v31  ;;  %v330_v58 = vmul.f32 %v902_v12, %v327_v52  ;;  %v331_v61 = vsel %vm271_vm3, %v329_v57, 0.0 }
  0x41   : > { %v332_v1 = vrot.slane %v331_v61, 4 }
  0x42   : > { %v338_v62 = vsel %vm271_vm3, %v330_v58, 0.0 }
  0x43   : > { %v339_v4 = vrot.slane %v338_v62, 4  ;;  %v333_v7 = vadd.f32 %v332_v1, %v331_v61 }
  0x45   : > { %v340_v8 = vadd.f32 %v339_v4, %v338_v62  ;;  %v334_v15 = vrot.slane %v333_v7, 2 }
  0x47   : > { %v341_v16 = vrot.slane %v340_v8, 2  ;;  %v335_v19 = vadd.f32 %v334_v15, %v333_v7 }
  0x49   : > { %v342_v20 = vadd.f32 %v341_v16, %v340_v8  ;;  %v336_v26 = vrot.slane %v335_v19, 1 }
  0x4b   : > { %v343_v27 = vrot.slane %v342_v20, 1 }
  0x4d   : > { %v638_v32 = vpop.eup %637 }
  0x4e   : > { %v294_v33 = vcombine.high %v638_v32, %v638_v32  ;;  %v296_v34 = vsel %vm271_vm3, %v638_v32, 0.0  ;;  %v345_v42 = vmul.f32 %v638_v32, %v900_v11 }
  0x4f   : > { %v297_v36 = vrot.slane %v296_v34, 4 }
  0x50   : > { %v303_v35 = vsel %vm271_vm3, %v294_v33, 0.0  ;;  %v346_v43 = vmul.f32 %v902_v12, %v294_v33  ;;  %v347_v46 = vsel %vm271_vm3, %v345_v42, 0.0  ;;  %v760_v42 = vmov 1966171168  }
  0x51   : > { %v304_v37 = vrot.slane %v303_v35, 4  ;;  %v298_v38 = vadd.f32 %v297_v36, %v296_v34  ;;  %v348_v50 = vrot.slane %v347_v46, 4 }
  0x52   : > { %v354_v47 = vsel %vm271_vm3, %v346_v43, 0.0  ;;  %v410_v43 = vunpack.c.l.s4 %v760_v42 }
  0x53   : > { %v305_v39 = vadd.f32 %v304_v37, %v303_v35  ;;  %v299_v40 = vrot.slane %v298_v38, 2  ;;  %v355_v51 = vrot.slane %v354_v47, 4  ;;  %v349_v55 = vadd.f32 %v348_v50, %v347_v46 }
  0x54   : > { %v411_v52 = vunpack.c.0.s8 %v410_v43 }
  0x55   : > { %v306_v41 = vrot.slane %v305_v39, 2  ;;  %v300_v44 = vadd.f32 %v299_v40, %v298_v38  ;;  %v356_v56 = vadd.f32 %v355_v51, %v354_v47  ;;  %v350_v59 = vrot.slane %v349_v55, 2 }
  0x56   : > { %v337_v38 = vadd.f32 %v336_v26, %v335_v19 }
  0x57   : > { %v307_v45 = vadd.f32 %v306_v41, %v305_v39  ;;  %v301_v48 = vrot.slane %v300_v44, 1  ;;  %v357_v60 = vrot.slane %v356_v56, 2  ;;  %v351_v63 = vadd.f32 %v350_v59, %v349_v55 }
  0x58   : > { %v414_v59 = vsub.s32 %v411_v52, %v883_v3 }
  0x59   : > { %v308_v49 = vrot.slane %v307_v45, 1  ;;  %v302_v53 = vadd.f32 %v301_v48, %v300_v44  ;;  %v358_v0 = vadd.f32 %v357_v60, %v356_v56  ;;  %v352_v5 = vrot.slane %v351_v63, 1 }
  0x5b   : > { %v309_v54 = vadd.f32 %v308_v49, %v307_v45  ;;  %639 = vrcp.f32 %v302_v53  ;;  %v359_v6 = vrot.slane %v358_v0, 1  ;;  %v353_v10 = vadd.f32 %v352_v5, %v351_v63 }
  0x5d   : > { %641 = vrcp.f32 %v309_v54  ;;  %v360_v13 = vadd.f32 %v359_v6, %v358_v0  ;;  %v405_v0 = vld [vmem:[%s885_s5] sm:$0x3] }
  0x5e   : > { %643 = vlog2.f32 %v302_v53 }
  0x5f   : > { %645 = vlog2.f32 %v309_v54 }
  0x68   : > { %v640_v9 = vpop.eup %639 }
  0x69   : > { %v369_v17 = vmul.f32 %v640_v9, %v353_v10 }
  0x6a   : > { %v642_v14 = vpop.eup %641 }
  0x6b   : > { %v370_v18 = vmul.f32 %v642_v14, %v360_v13  ;;  %v395_v24 = vsub.f32 1.0, %v369_v17  ;;  %v644_v30 = vpop.eup %643 }
  0x6c   : > { %v646_v33 = vpop.eup %645  ;;  %v362_v39 = vmul.f32 0.6931472, %v644_v30 }
  0x6d   : > { %v396_v25 = vsub.f32 1.0, %v370_v18  ;;  %v397_v36 = vmax.f32 %v395_v24, 0.0 }
  0x6e   : > { %v365_v48 = vsub.f32 %v337_v38, %v362_v39 }
  0x6f   : > { %v398_v37 = vmax.f32 %v396_v25, 0.0  ;;  %v399_v46 = vmul.f32 %v397_v36, %v397_v36 }
  0x71   : > { %v400_v47 = vmul.f32 %v398_v37, %v398_v37  ;;  %v401_v55 = vsub.f32 0.0, %v399_v46 }
  0x73   : > { %v402_v56 = vsub.f32 0.0, %v400_v47 }
  0xa7   : > { %v375_v21 = vpop.permute.xlu0 %374 }
  0xa8   : > { %v377_v22 = vmul.f32 %v900_v11, %v375_v21  ;;  %v378_v23 = vmul.f32 %v902_v12, %v375_v21  ;;  %v344_v11 = vadd.f32 %v343_v27, %v342_v20  ;;  %v364_v12 = vmul.f32 0.6931472, %v646_v33 }
  0xaa   : > { %v379_v28 = vsel %vm271_vm3, %v377_v22, 0.0  ;;  %v386_v29 = vsel %vm271_vm3, %v378_v23, 0.0  ;;  %v366_v49 = vsub.f32 %v344_v11, %v364_v12 }
  0xab   : > { %v380_v31 = vrot.slane %v379_v28, 4  ;;  %v387_v32 = vrot.slane %v386_v29, 4 }
  0xad   : > { %v381_v34 = vadd.f32 %v380_v31, %v379_v28  ;;  %v388_v35 = vadd.f32 %v387_v32, %v386_v29 }
  0xaf   : > { %v382_v40 = vrot.slane %v381_v34, 2  ;;  %v389_v41 = vrot.slane %v388_v35, 2 }
  0xb1   : > { %v383_v44 = vadd.f32 %v382_v40, %v381_v34  ;;  %v390_v45 = vadd.f32 %v389_v41, %v388_v35 }
  0xb3   : > { %v384_v50 = vrot.slane %v383_v44, 1  ;;  %v391_v51 = vrot.slane %v390_v45, 1 }
  0xb5   : > { %v385_v53 = vadd.f32 %v384_v50, %v383_v44  ;;  %v392_v54 = vadd.f32 %v391_v51, %v390_v45 }
  0xb7   : > { %v393_v57 = vmul.f32 %v385_v53, %v365_v48  ;;  %v394_v58 = vmul.f32 %v392_v54, %v366_v49 }
  0xb9   : > { %v403_v60 = vmul.f32 %v401_v55, %v393_v57  ;;  %v404_v61 = vmul.f32 %v402_v56, %v394_v58 }
  0xbb   : > { %v408_v62 = vcombine.low %v403_v60, %v404_v61 }
  0xbd   : > { %v415_v63 = vrot.slane %v408_v62, %v414_v59 }
  0xbf   : > { %v422_v1 = vrot.slane %v415_v63, %v414_v59 }
  0xc1   : > { %v424_v4 = vadd.f32 %v422_v1, %v405_v0 }
  0xc3   : > { %429 = vst.msk [vmem:[%s885_s5] sm:$0x3] %vm879_vm0, %v424_v4 }
  0xc4   : > { %688 = shalt.err (!%p685_p5)
}
  0xc5   : > { %s689_s24 = scalar_lea.hbm %s445_s23, 32  ;;  %s693_s6 = scalar_lea.hbm %s969_s3, 64 }
  0xc6   : > { %p690_p6 = scmp.ne.s32.totalorder %s445_s23, %s689_s24  ;;  %p694_p4 = scmp.lt.s32.totalorder %s445_s23, %s969_s3 }
  0xc7   : > { %p695_p13 = scmp.lt.s32.totalorder %s693_s6, %s689_s24 }
  0xc8   : > { %p691_p7 = pnand %p690_p6, %p833_p9 }
  0xc9   : > { %p696_p12 = por %p695_p13, %p694_p4 }
  0xca   : > { %p692_p10 = pneg %p691_p7 }
  0xcc   : > { %p697_p8 = pnand %p696_p12, %p692_p10 }
  0xce   : > { %700 = shalt.err (!%p697_p8)
}
  0xcf   : > { %572 = dma.vmem_to_hbm [thread:$0]  (%p833_p9), %s448_s18, 32, %s445_s23, %s431_s28  }
  0xd0 PF: > { %s459_s9 = sand.u32 1, %s735_s12   ;;  %p977_p11 = scmp.ne.s32.totalorder %s973_s27, 0 }
  0xd1   : > { %p978_p0 = scmp.ge.s32.totalorder %s755_s17, 2  ;;  %s460_s10 = scalar_lea.sflag [#allocation4], %s459_s9 }
  0xd3   : > { %p579_p1 = pnand %p978_p0, %p977_p11 }
  0xd5   : > { %p580_p2 = pneg %p579_p1 }
  0xd7   : > { %730 = dma.done.wait (%p580_p2), %s460_s10, 32  }
  0xd8   : > { %732 = vsyncadd (%p580_p2), %s460_s10, 4294967264  ;;  %s19_s17 = sadd.s32 1, %s755_s17   ;;  %s979_s12 = smov %s739_s13 }
  0xd9   : > { %p16_p3 = scmp.ge.s32.totalorder %s19_s17, 4   ;;  %s980_s13 = smov %s743_s14 }
  0xda   : > { %s981_s14 = smov %s838_s26  ;;  %s982_s15 = smov %s751_s16 }
  0xdb   : > { %s983_s16 = smov %s985_s20  ;;  %18 = sbr.rel (!%p16_p3) target bundleno = 6 (0x6), region = 84 }
  0xe0   :  { %465 = vsyncpa [#allocation3], 1 }
  0xe1   :  { %467 = vsyncpa [#allocation3 + $0x1], 1 }
  0xe2   :  { %468 = vsyncpa [#allocation4], 1 }
  0xe3   :  { %470 = vsyncpa [#allocation4 + $0x1], 1 }

</bundles_post_ra>
